<compile_context>
chip_gen: v7x
topology: tpu7x:2x2x1
jax: 0.10.0
libtpu: 0.0.40
codegen_flags: <defaults>
</compile_context>

<pallas_src>
import functools

import jax
import jax.numpy as jnp
from jax.experimental import pallas as pl
from jax.experimental.pallas import tpu as pltpu


def _round_up(x, m):
    return ((x + m - 1) // m) * m


def _attention_kernel(q_ref, k_ref, v_ref, m_ref, out_ref, attn_ref):
    # Batch-last layout: the TB batch tile is the lane (last) dimension.
    #   q_ref: (Q, E, TB)   k_ref/v_ref: (K, E, TB)   m_ref: (K, TB) int8
    K = k_ref.shape[0]

    # Cast to f32 after the load (inputs may be bf16; v5e has no bf16 VPU).
    q = q_ref[...].astype(jnp.float32)                     # (Q, E, TB)

    # energy[q,k,b] = sum_e q[q,e,b] * k[k,e,b]
    # Unrolled over K: per-k multiply + sublane reduce, no (Q,K,E,TB) temp.
    cols = []
    for kk in range(K):
        k_slice = k_ref[kk].astype(jnp.float32)            # (E, TB)
        cols.append(jnp.sum(q * k_slice[None, :, :], axis=1))   # (Q, TB)
    energy = jnp.stack(cols, axis=1)                       # (Q, K, TB)

    # masked_fill(mask, -1e20), mask broadcast over Q (direct int8 compare).
    masked = (m_ref[...] != 0)[None, :, :]                 # (1, K, TB)
    energy = jnp.where(masked, jnp.float32(-1e20), energy)

    # Numerically-stable softmax over K (axis=1).  Rows where every key is
    # masked become uniform 1/K, matching masked_fill(-1e20)+softmax.
    e_max = jnp.max(energy, axis=1, keepdims=True)         # (Q, 1, TB)
    p = jnp.exp(energy - e_max)                            # (Q, K, TB)
    denom = jnp.sum(p, axis=1, keepdims=True)              # (Q, 1, TB)
    attn = p * pl.reciprocal(denom, approx=True)           # (Q, K, TB)

    # output[q,e,b] = sum_k attn[q,k,b] * v[k,e,b]  (unrolled K accumulation)
    out = attn[:, 0, :][:, None, :] * v_ref[0].astype(jnp.float32)[None, :, :]
    for kk in range(1, K):
        v_slice = v_ref[kk].astype(jnp.float32)            # (E, TB)
        out = out + attn[:, kk, :][:, None, :] * v_slice[None, :, :]

    out_ref[...] = jnp.tanh(out).astype(out_ref.dtype)
    attn_ref[...] = attn.astype(attn_ref.dtype)


@functools.partial(jax.jit, static_argnames=("block_n",))
def attention_forward(query, keys, values, mask, *, block_n=2048):
    """Pallas equivalent of Attention.forward(query, keys, values, mask).

    query:  (N, Q, E), keys/values: (N, K, E), mask: (N, K) bool (True=masked).
    Returns (tanh(output) with shape (N, Q, E), attention with shape (N, Q, K)).
    """
    N, Q, E = query.shape
    _, K, _ = keys.shape
    dtype = query.dtype

    # --- batch tile: multiple of 128 lanes; keep >=2 grid steps when there is
    #     enough work so the batch axis can be sharded across TensorCores.
    TB = min(block_n, _round_up(N, 128))
    if N > 128 and _round_up(N, TB) // TB < 2:
        TB = _round_up(-(-N // 2), 128)
    Npad = _round_up(N, TB)
    grid = (Npad // TB,)

    # --- mask as compact (N, K) int8 (no f32 / Q-broadcast materialization)
    mask2d = mask.reshape(N, K) if mask.ndim == 3 else mask
    mask_i8 = mask2d.astype(jnp.int8)

    # --- pad batch to a multiple of TB (padded rows compute harmless values:
    #     zero inputs + unmasked pad -> uniform softmax, tanh(0)=0; sliced off)
    def pad_n(x):
        if Npad == N:
            return x
        pads = [(0, Npad - N)] + [(0, 0)] * (x.ndim - 1)
        return jnp.pad(x, pads)

    # --- batch-last layout so the TB tile is the lane dim inside the kernel.
    #     Native dtype through pad/transpose/DMA (no f32 upcast); pad+transpose
    #     should fuse into a single XLA copy.
    q_t = jnp.transpose(pad_n(query), (1, 2, 0))    # (Q, E, Npad)
    k_t = jnp.transpose(pad_n(keys), (1, 2, 0))     # (K, E, Npad)
    v_t = jnp.transpose(pad_n(values), (1, 2, 0))   # (K, E, Npad)
    m_t = jnp.transpose(pad_n(mask_i8), (1, 0))     # (K, Npad)

    out_shapes = (
        jax.ShapeDtypeStruct((Q, E, Npad), dtype),    # tanh(output), transposed
        jax.ShapeDtypeStruct((Q, K, Npad), dtype),    # attention, transposed
    )

    grid_spec = pltpu.PrefetchScalarGridSpec(
        num_scalar_prefetch=0,
        grid=grid,
        in_specs=[
            pl.BlockSpec((Q, E, TB), lambda n: (0, 0, n)),
            pl.BlockSpec((K, E, TB), lambda n: (0, 0, n)),
            pl.BlockSpec((K, E, TB), lambda n: (0, 0, n)),
            pl.BlockSpec((K, TB), lambda n: (0, n)),
        ],
        out_specs=[
            pl.BlockSpec((Q, E, TB), lambda n: (0, 0, n)),
            pl.BlockSpec((Q, K, TB), lambda n: (0, 0, n)),
        ],
    )

    itemsize = jnp.dtype(dtype).itemsize
    cost = pl.CostEstimate(
        flops=Npad * (4 * Q * K * E + 4 * Q * K),
        transcendentals=Npad * Q * (K + E + 1),
        bytes_accessed=itemsize * Npad * (2 * Q * E + 2 * K * E + Q * K)
        + Npad * K,
    )

    out_t, attn_t = pl.pallas_call(
        _attention_kernel,
        out_shape=out_shapes,
        grid_spec=grid_spec,
        compiler_params=pltpu.CompilerParams(
            dimension_semantics=("parallel",),
            # Explicit VMEM budget: ~11 MiB needed at TB=2048 f32 (double-
            # buffered); v5e's scoped default is 16 MiB, so set it explicitly.
            vmem_limit_bytes=32 * 1024 * 1024,
        ),
        cost_estimate=cost,
    )(q_t, k_t, v_t, m_t)

    out = jnp.transpose(out_t, (2, 0, 1))[:N]     # (N, Q, E)
    attn = jnp.transpose(attn_t, (2, 0, 1))[:N]   # (N, Q, K)
    return out, attn


def _reference(query, keys, values, mask):
    """Pure-JAX reference mirroring the PyTorch forward (Q == 1 path)."""
    energy = jnp.einsum('nqe,nke->nqk', query, keys)            # (N, Q, K)
    energy = jnp.where(mask[:, None, :], jnp.float32(-1e20), energy)
    attention = jax.nn.softmax(energy, axis=2)
    output = jnp.einsum('nqk,nke->nqe', attention, values)
    return jnp.tanh(output), attention


if __name__ == "__main__":
    key = jax.random.PRNGKey(0)
    N, Q, K, E = 2, 1, 8, 32   # sentence_embed_dim = 32, num_reviews = 8

    kq, kk, kv, km = jax.random.split(key, 4)
    query = jax.random.normal(kq, (N, Q, E), dtype=jnp.float32)
    keys = jax.random.normal(kk, (N, K, E), dtype=jnp.float32)
    values = jax.random.normal(kv, (N, K, E), dtype=jnp.float32)
    mask = jax.random.bernoulli(km, p=0.25, shape=(N, K))       # True => masked

    out, attn = attention_forward(query, keys, values, mask)
    out, attn = jax.block_until_ready((out, attn))

    ref_out, ref_attn = _reference(query, keys, values, mask)
    assert out.shape == (N, Q, E) and attn.shape == (N, Q, K)
    # approx=True reciprocal on the EUP trades a few ULPs for a free slot;
    # tolerance relaxed accordingly (attention rows sum to 1 within ~1e-3).
    assert jnp.allclose(out, ref_out, atol=2e-3, rtol=2e-3), "output mismatch"
    assert jnp.allclose(attn, ref_attn, atol=2e-3, rtol=2e-3), "attention mismatch"

    print("KERNEL_OK")
</pallas_src>

<mosaic_0001>
module attributes {stable_mosaic.version = 11 : i64} {
  func.func @_attention_kernel(%arg0: i32, %arg1: memref<1x32x128xf32, #tpu.memory_space<vmem>>, %arg2: memref<8x32x128xf32, #tpu.memory_space<vmem>>, %arg3: memref<8x32x128xf32, #tpu.memory_space<vmem>>, %arg4: memref<8x128xi8, #tpu.memory_space<vmem>>, %arg5: memref<1x32x128xf32, #tpu.memory_space<vmem>>, %arg6: memref<1x8x128xf32, #tpu.memory_space<vmem>>) attributes {dimension_semantics = [#tpu.dimension_semantics<parallel>], iteration_bounds = array<i64: 1>, scalar_prefetch = 0 : i64, scratch_operands = 0 : i64, tpu.core_type = #tpu.core_type<tc>, window_params = [{transform_indices = @transform_0, window_bounds = array<i64: 1, 32, 128>}, {transform_indices = @transform_1, window_bounds = array<i64: 8, 32, 128>}, {transform_indices = @transform_2, window_bounds = array<i64: 8, 32, 128>}, {transform_indices = @transform_3, window_bounds = array<i64: 8, 128>}, {transform_indices = @transform_4, window_bounds = array<i64: 1, 32, 128>}, {transform_indices = @transform_5, window_bounds = array<i64: 1, 8, 128>}]} {
    %c0 = arith.constant 0 : index
    %c0_0 = arith.constant 0 : index
    %c0_1 = arith.constant 0 : index
    %0 = vector.load %arg1[%c0, %c0_0, %c0_1] : memref<1x32x128xf32, #tpu.memory_space<vmem>>, vector<1x32x128xf32>
    %c0_2 = arith.constant 0 : index
    %c0_3 = arith.constant 0 : index
    %c0_4 = arith.constant 0 : index
    %1 = vector.load %arg2[%c0_2, %c0_3, %c0_4] : memref<8x32x128xf32, #tpu.memory_space<vmem>>, vector<1x32x128xf32>
    %2 = vector.shape_cast %1 : vector<1x32x128xf32> to vector<32x128xf32>
    %3 = vector.shape_cast %2 : vector<32x128xf32> to vector<1x32x128xf32>
    %4 = arith.mulf %0, %3 : vector<1x32x128xf32>
    %cst = arith.constant dense<0.000000e+00> : vector<1x128xf32>
    %5 = vector.multi_reduction <add>, %4, %cst [1] : vector<1x32x128xf32> to vector<1x128xf32>
    %c1 = arith.constant 1 : index
    %c0_5 = arith.constant 0 : index
    %c0_6 = arith.constant 0 : index
    %6 = vector.load %arg2[%c1, %c0_5, %c0_6] : memref<8x32x128xf32, #tpu.memory_space<vmem>>, vector<1x32x128xf32>
    %7 = vector.shape_cast %6 : vector<1x32x128xf32> to vector<32x128xf32>
    %8 = vector.shape_cast %7 : vector<32x128xf32> to vector<1x32x128xf32>
    %9 = arith.mulf %0, %8 : vector<1x32x128xf32>
    %cst_7 = arith.constant dense<0.000000e+00> : vector<1x128xf32>
    %10 = vector.multi_reduction <add>, %9, %cst_7 [1] : vector<1x32x128xf32> to vector<1x128xf32>
    %c2 = arith.constant 2 : index
    %c0_8 = arith.constant 0 : index
    %c0_9 = arith.constant 0 : index
    %11 = vector.load %arg2[%c2, %c0_8, %c0_9] : memref<8x32x128xf32, #tpu.memory_space<vmem>>, vector<1x32x128xf32>
    %12 = vector.shape_cast %11 : vector<1x32x128xf32> to vector<32x128xf32>
    %13 = vector.shape_cast %12 : vector<32x128xf32> to vector<1x32x128xf32>
    %14 = arith.mulf %0, %13 : vector<1x32x128xf32>
    %cst_10 = arith.constant dense<0.000000e+00> : vector<1x128xf32>
    %15 = vector.multi_reduction <add>, %14, %cst_10 [1] : vector<1x32x128xf32> to vector<1x128xf32>
    %c3 = arith.constant 3 : index
    %c0_11 = arith.constant 0 : index
    %c0_12 = arith.constant 0 : index
    %16 = vector.load %arg2[%c3, %c0_11, %c0_12] : memref<8x32x128xf32, #tpu.memory_space<vmem>>, vector<1x32x128xf32>
    %17 = vector.shape_cast %16 : vector<1x32x128xf32> to vector<32x128xf32>
    %18 = vector.shape_cast %17 : vector<32x128xf32> to vector<1x32x128xf32>
    %19 = arith.mulf %0, %18 : vector<1x32x128xf32>
    %cst_13 = arith.constant dense<0.000000e+00> : vector<1x128xf32>
    %20 = vector.multi_reduction <add>, %19, %cst_13 [1] : vector<1x32x128xf32> to vector<1x128xf32>
    %c4 = arith.constant 4 : index
    %c0_14 = arith.constant 0 : index
    %c0_15 = arith.constant 0 : index
    %21 = vector.load %arg2[%c4, %c0_14, %c0_15] : memref<8x32x128xf32, #tpu.memory_space<vmem>>, vector<1x32x128xf32>
    %22 = vector.shape_cast %21 : vector<1x32x128xf32> to vector<32x128xf32>
    %23 = vector.shape_cast %22 : vector<32x128xf32> to vector<1x32x128xf32>
    %24 = arith.mulf %0, %23 : vector<1x32x128xf32>
    %cst_16 = arith.constant dense<0.000000e+00> : vector<1x128xf32>
    %25 = vector.multi_reduction <add>, %24, %cst_16 [1] : vector<1x32x128xf32> to vector<1x128xf32>
    %c5 = arith.constant 5 : index
    %c0_17 = arith.constant 0 : index
    %c0_18 = arith.constant 0 : index
    %26 = vector.load %arg2[%c5, %c0_17, %c0_18] : memref<8x32x128xf32, #tpu.memory_space<vmem>>, vector<1x32x128xf32>
    %27 = vector.shape_cast %26 : vector<1x32x128xf32> to vector<32x128xf32>
    %28 = vector.shape_cast %27 : vector<32x128xf32> to vector<1x32x128xf32>
    %29 = arith.mulf %0, %28 : vector<1x32x128xf32>
    %cst_19 = arith.constant dense<0.000000e+00> : vector<1x128xf32>
    %30 = vector.multi_reduction <add>, %29, %cst_19 [1] : vector<1x32x128xf32> to vector<1x128xf32>
    %c6 = arith.constant 6 : index
    %c0_20 = arith.constant 0 : index
    %c0_21 = arith.constant 0 : index
    %31 = vector.load %arg2[%c6, %c0_20, %c0_21] : memref<8x32x128xf32, #tpu.memory_space<vmem>>, vector<1x32x128xf32>
    %32 = vector.shape_cast %31 : vector<1x32x128xf32> to vector<32x128xf32>
    %33 = vector.shape_cast %32 : vector<32x128xf32> to vector<1x32x128xf32>
    %34 = arith.mulf %0, %33 : vector<1x32x128xf32>
    %cst_22 = arith.constant dense<0.000000e+00> : vector<1x128xf32>
    %35 = vector.multi_reduction <add>, %34, %cst_22 [1] : vector<1x32x128xf32> to vector<1x128xf32>
    %c7 = arith.constant 7 : index
    %c0_23 = arith.constant 0 : index
    %c0_24 = arith.constant 0 : index
    %36 = vector.load %arg2[%c7, %c0_23, %c0_24] : memref<8x32x128xf32, #tpu.memory_space<vmem>>, vector<1x32x128xf32>
    %37 = vector.shape_cast %36 : vector<1x32x128xf32> to vector<32x128xf32>
    %38 = vector.shape_cast %37 : vector<32x128xf32> to vector<1x32x128xf32>
    %39 = arith.mulf %0, %38 : vector<1x32x128xf32>
    %cst_25 = arith.constant dense<0.000000e+00> : vector<1x128xf32>
    %40 = vector.multi_reduction <add>, %39, %cst_25 [1] : vector<1x32x128xf32> to vector<1x128xf32>
    %41 = vector.shape_cast %5 : vector<1x128xf32> to vector<1x1x128xf32>
    %42 = vector.shape_cast %10 : vector<1x128xf32> to vector<1x1x128xf32>
    %43 = vector.shape_cast %15 : vector<1x128xf32> to vector<1x1x128xf32>
    %44 = vector.shape_cast %20 : vector<1x128xf32> to vector<1x1x128xf32>
    %45 = vector.shape_cast %25 : vector<1x128xf32> to vector<1x1x128xf32>
    %46 = vector.shape_cast %30 : vector<1x128xf32> to vector<1x1x128xf32>
    %47 = vector.shape_cast %35 : vector<1x128xf32> to vector<1x1x128xf32>
    %48 = vector.shape_cast %40 : vector<1x128xf32> to vector<1x1x128xf32>
    %49 = tpu.concatenate %41, %42, %43, %44, %45, %46, %47, %48 in 1 : vector<1x1x128xf32>, vector<1x1x128xf32>, vector<1x1x128xf32>, vector<1x1x128xf32>, vector<1x1x128xf32>, vector<1x1x128xf32>, vector<1x1x128xf32>, vector<1x1x128xf32> -> vector<1x8x128xf32>
    %c0_26 = arith.constant 0 : index
    %c0_27 = arith.constant 0 : index
    %50 = vector.load %arg4[%c0_26, %c0_27] : memref<8x128xi8, #tpu.memory_space<vmem>>, vector<8x128xi8>
    %c0_i8 = arith.constant 0 : i8
    %51 = vector.broadcast %c0_i8 : i8 to vector<8x128xi8>
    %52 = arith.cmpi ne, %50, %51 : vector<8x128xi8>
    %53 = vector.shape_cast %52 : vector<8x128xi1> to vector<1x8x128xi1>
    %cst_28 = arith.constant -1.000000e+20 : f32
    %54 = vector.broadcast %cst_28 : f32 to vector<1x8x128xf32>
    %55 = arith.select %53, %54, %49 : vector<1x8x128xi1>, vector<1x8x128xf32>
    %cst_29 = arith.constant dense<0xFF800000> : vector<1x128xf32>
    %56 = vector.multi_reduction <maximumf>, %55, %cst_29 [1] : vector<1x8x128xf32> to vector<1x128xf32>
    %57 = vector.shape_cast %56 : vector<1x128xf32> to vector<1x1x128xf32>
    %58 = vector.broadcast %57 : vector<1x1x128xf32> to vector<1x8x128xf32>
    %59 = arith.subf %55, %58 : vector<1x8x128xf32>
    %60 = math.exp %59 : vector<1x8x128xf32>
    %cst_30 = arith.constant dense<0.000000e+00> : vector<1x128xf32>
    %61 = vector.multi_reduction <add>, %60, %cst_30 [1] : vector<1x8x128xf32> to vector<1x128xf32>
    %62 = vector.shape_cast %61 : vector<1x128xf32> to vector<1x1x128xf32>
    %63 = tpu.reciprocal %62 {approx = true} : vector<1x1x128xf32> -> vector<1x1x128xf32>
    %64 = vector.broadcast %63 : vector<1x1x128xf32> to vector<1x8x128xf32>
    %65 = arith.mulf %60, %64 : vector<1x8x128xf32>
    %66 = vector.extract_strided_slice %65 {offsets = [0, 0, 0], sizes = [1, 1, 128], strides = [1, 1, 1]} : vector<1x8x128xf32> to vector<1x1x128xf32>
    %67 = vector.shape_cast %66 : vector<1x1x128xf32> to vector<1x128xf32>
    %68 = vector.shape_cast %67 : vector<1x128xf32> to vector<1x1x128xf32>
    %c0_31 = arith.constant 0 : index
    %c0_32 = arith.constant 0 : index
    %c0_33 = arith.constant 0 : index
    %69 = vector.load %arg3[%c0_31, %c0_32, %c0_33] : memref<8x32x128xf32, #tpu.memory_space<vmem>>, vector<1x32x128xf32>
    %70 = vector.shape_cast %69 : vector<1x32x128xf32> to vector<32x128xf32>
    %71 = vector.shape_cast %70 : vector<32x128xf32> to vector<1x32x128xf32>
    %72 = vector.broadcast %68 : vector<1x1x128xf32> to vector<1x32x128xf32>
    %73 = arith.mulf %72, %71 : vector<1x32x128xf32>
    %c1_34 = arith.constant 1 : index
    %c0_35 = arith.constant 0 : index
    %c0_36 = arith.constant 0 : index
    %74 = vector.load %arg3[%c1_34, %c0_35, %c0_36] : memref<8x32x128xf32, #tpu.memory_space<vmem>>, vector<1x32x128xf32>
    %75 = vector.shape_cast %74 : vector<1x32x128xf32> to vector<32x128xf32>
    %76 = vector.extract_strided_slice %65 {offsets = [0, 1, 0], sizes = [1, 1, 128], strides = [1, 1, 1]} : vector<1x8x128xf32> to vector<1x1x128xf32>
    %77 = vector.shape_cast %76 : vector<1x1x128xf32> to vector<1x128xf32>
    %78 = vector.shape_cast %77 : vector<1x128xf32> to vector<1x1x128xf32>
    %79 = vector.shape_cast %75 : vector<32x128xf32> to vector<1x32x128xf32>
    %80 = vector.broadcast %78 : vector<1x1x128xf32> to vector<1x32x128xf32>
    %81 = arith.mulf %80, %79 : vector<1x32x128xf32>
    %82 = arith.addf %73, %81 : vector<1x32x128xf32>
    %c2_37 = arith.constant 2 : index
    %c0_38 = arith.constant 0 : index
    %c0_39 = arith.constant 0 : index
    %83 = vector.load %arg3[%c2_37, %c0_38, %c0_39] : memref<8x32x128xf32, #tpu.memory_space<vmem>>, vector<1x32x128xf32>
    %84 = vector.shape_cast %83 : vector<1x32x128xf32> to vector<32x128xf32>
    %85 = vector.extract_strided_slice %65 {offsets = [0, 2, 0], sizes = [1, 1, 128], strides = [1, 1, 1]} : vector<1x8x128xf32> to vector<1x1x128xf32>
    %86 = vector.shape_cast %85 : vector<1x1x128xf32> to vector<1x128xf32>
    %87 = vector.shape_cast %86 : vector<1x128xf32> to vector<1x1x128xf32>
    %88 = vector.shape_cast %84 : vector<32x128xf32> to vector<1x32x128xf32>
    %89 = vector.broadcast %87 : vector<1x1x128xf32> to vector<1x32x128xf32>
    %90 = arith.mulf %89, %88 : vector<1x32x128xf32>
    %91 = arith.addf %82, %90 : vector<1x32x128xf32>
    %c3_40 = arith.constant 3 : index
    %c0_41 = arith.constant 0 : index
    %c0_42 = arith.constant 0 : index
    %92 = vector.load %arg3[%c3_40, %c0_41, %c0_42] : memref<8x32x128xf32, #tpu.memory_space<vmem>>, vector<1x32x128xf32>
    %93 = vector.shape_cast %92 : vector<1x32x128xf32> to vector<32x128xf32>
    %94 = vector.extract_strided_slice %65 {offsets = [0, 3, 0], sizes = [1, 1, 128], strides = [1, 1, 1]} : vector<1x8x128xf32> to vector<1x1x128xf32>
    %95 = vector.shape_cast %94 : vector<1x1x128xf32> to vector<1x128xf32>
    %96 = vector.shape_cast %95 : vector<1x128xf32> to vector<1x1x128xf32>
    %97 = vector.shape_cast %93 : vector<32x128xf32> to vector<1x32x128xf32>
    %98 = vector.broadcast %96 : vector<1x1x128xf32> to vector<1x32x128xf32>
    %99 = arith.mulf %98, %97 : vector<1x32x128xf32>
    %100 = arith.addf %91, %99 : vector<1x32x128xf32>
    %c4_43 = arith.constant 4 : index
    %c0_44 = arith.constant 0 : index
    %c0_45 = arith.constant 0 : index
    %101 = vector.load %arg3[%c4_43, %c0_44, %c0_45] : memref<8x32x128xf32, #tpu.memory_space<vmem>>, vector<1x32x128xf32>
    %102 = vector.shape_cast %101 : vector<1x32x128xf32> to vector<32x128xf32>
    %103 = vector.extract_strided_slice %65 {offsets = [0, 4, 0], sizes = [1, 1, 128], strides = [1, 1, 1]} : vector<1x8x128xf32> to vector<1x1x128xf32>
    %104 = vector.shape_cast %103 : vector<1x1x128xf32> to vector<1x128xf32>
    %105 = vector.shape_cast %104 : vector<1x128xf32> to vector<1x1x128xf32>
    %106 = vector.shape_cast %102 : vector<32x128xf32> to vector<1x32x128xf32>
    %107 = vector.broadcast %105 : vector<1x1x128xf32> to vector<1x32x128xf32>
    %108 = arith.mulf %107, %106 : vector<1x32x128xf32>
    %109 = arith.addf %100, %108 : vector<1x32x128xf32>
    %c5_46 = arith.constant 5 : index
    %c0_47 = arith.constant 0 : index
    %c0_48 = arith.constant 0 : index
    %110 = vector.load %arg3[%c5_46, %c0_47, %c0_48] : memref<8x32x128xf32, #tpu.memory_space<vmem>>, vector<1x32x128xf32>
    %111 = vector.shape_cast %110 : vector<1x32x128xf32> to vector<32x128xf32>
    %112 = vector.extract_strided_slice %65 {offsets = [0, 5, 0], sizes = [1, 1, 128], strides = [1, 1, 1]} : vector<1x8x128xf32> to vector<1x1x128xf32>
    %113 = vector.shape_cast %112 : vector<1x1x128xf32> to vector<1x128xf32>
    %114 = vector.shape_cast %113 : vector<1x128xf32> to vector<1x1x128xf32>
    %115 = vector.shape_cast %111 : vector<32x128xf32> to vector<1x32x128xf32>
    %116 = vector.broadcast %114 : vector<1x1x128xf32> to vector<1x32x128xf32>
    %117 = arith.mulf %116, %115 : vector<1x32x128xf32>
    %118 = arith.addf %109, %117 : vector<1x32x128xf32>
    %c6_49 = arith.constant 6 : index
    %c0_50 = arith.constant 0 : index
    %c0_51 = arith.constant 0 : index
    %119 = vector.load %arg3[%c6_49, %c0_50, %c0_51] : memref<8x32x128xf32, #tpu.memory_space<vmem>>, vector<1x32x128xf32>
    %120 = vector.shape_cast %119 : vector<1x32x128xf32> to vector<32x128xf32>
    %121 = vector.extract_strided_slice %65 {offsets = [0, 6, 0], sizes = [1, 1, 128], strides = [1, 1, 1]} : vector<1x8x128xf32> to vector<1x1x128xf32>
    %122 = vector.shape_cast %121 : vector<1x1x128xf32> to vector<1x128xf32>
    %123 = vector.shape_cast %122 : vector<1x128xf32> to vector<1x1x128xf32>
    %124 = vector.shape_cast %120 : vector<32x128xf32> to vector<1x32x128xf32>
    %125 = vector.broadcast %123 : vector<1x1x128xf32> to vector<1x32x128xf32>
    %126 = arith.mulf %125, %124 : vector<1x32x128xf32>
    %127 = arith.addf %118, %126 : vector<1x32x128xf32>
    %c7_52 = arith.constant 7 : index
    %c0_53 = arith.constant 0 : index
    %c0_54 = arith.constant 0 : index
    %128 = vector.load %arg3[%c7_52, %c0_53, %c0_54] : memref<8x32x128xf32, #tpu.memory_space<vmem>>, vector<1x32x128xf32>
    %129 = vector.shape_cast %128 : vector<1x32x128xf32> to vector<32x128xf32>
    %130 = vector.extract_strided_slice %65 {offsets = [0, 7, 0], sizes = [1, 1, 128], strides = [1, 1, 1]} : vector<1x8x128xf32> to vector<1x1x128xf32>
    %131 = vector.shape_cast %130 : vector<1x1x128xf32> to vector<1x128xf32>
    %132 = vector.shape_cast %131 : vector<1x128xf32> to vector<1x1x128xf32>
    %133 = vector.shape_cast %129 : vector<32x128xf32> to vector<1x32x128xf32>
    %134 = vector.broadcast %132 : vector<1x1x128xf32> to vector<1x32x128xf32>
    %135 = arith.mulf %134, %133 : vector<1x32x128xf32>
    %136 = arith.addf %127, %135 : vector<1x32x128xf32>
    %137 = math.tanh %136 : vector<1x32x128xf32>
    %c0_55 = arith.constant 0 : index
    %c0_56 = arith.constant 0 : index
    %c0_57 = arith.constant 0 : index
    %138 = vector.load %arg5[%c0_55, %c0_56, %c0_57] : memref<1x32x128xf32, #tpu.memory_space<vmem>>, vector<1x32x128xf32>
    tpu.vector_store %arg5[%c0_55, %c0_56, %c0_57], %137 {strides = array<i32>} : memref<1x32x128xf32, #tpu.memory_space<vmem>>, vector<1x32x128xf32>,
    %c0_58 = arith.constant 0 : index
    %c0_59 = arith.constant 0 : index
    %c0_60 = arith.constant 0 : index
    %139 = vector.load %arg6[%c0_58, %c0_59, %c0_60] : memref<1x8x128xf32, #tpu.memory_space<vmem>>, vector<1x8x128xf32>
    tpu.vector_store %arg6[%c0_58, %c0_59, %c0_60], %65 {strides = array<i32>} : memref<1x8x128xf32, #tpu.memory_space<vmem>>, vector<1x8x128xf32>,
    return
  }
  func.func @transform_0(%arg0: i32) -> (i32, i32, i32) {
    %c0_i32 = arith.constant 0 : i32
    %c0_i32_0 = arith.constant 0 : i32
    %c0_i32_1 = arith.constant 0 : i32
    return %c0_i32, %c0_i32_0, %arg0 : i32, i32, i32
  }
  func.func @transform_1(%arg0: i32) -> (i32, i32, i32) {
    %c0_i32 = arith.constant 0 : i32
    %c0_i32_0 = arith.constant 0 : i32
    %c0_i32_1 = arith.constant 0 : i32
    return %c0_i32, %c0_i32_0, %arg0 : i32, i32, i32
  }
  func.func @transform_2(%arg0: i32) -> (i32, i32, i32) {
    %c0_i32 = arith.constant 0 : i32
    %c0_i32_0 = arith.constant 0 : i32
    %c0_i32_1 = arith.constant 0 : i32
    return %c0_i32, %c0_i32_0, %arg0 : i32, i32, i32
  }
  func.func @transform_3(%arg0: i32) -> (i32, i32) {
    %c0_i32 = arith.constant 0 : i32
    %c0_i32_0 = arith.constant 0 : i32
    return %c0_i32, %arg0 : i32, i32
  }
  func.func @transform_4(%arg0: i32) -> (i32, i32, i32) {
    %c0_i32 = arith.constant 0 : i32
    %c0_i32_0 = arith.constant 0 : i32
    %c0_i32_1 = arith.constant 0 : i32
    return %c0_i32, %c0_i32_0, %arg0 : i32, i32, i32
  }
  func.func @transform_5(%arg0: i32) -> (i32, i32, i32) {
    %c0_i32 = arith.constant 0 : i32
    %c0_i32_0 = arith.constant 0 : i32
    %c0_i32_1 = arith.constant 0 : i32
    return %c0_i32, %c0_i32_0, %arg0 : i32, i32, i32
  }
}

</mosaic_0001>

<bundles_post_ra>
// kernel: attention_forward.1
= control target key start
LH: loop header
LB: loop body
LE: loop exit
PB: predicated region body
PF: predicated region fallthrough
CT: control target
= control target key end

     0   :  { %vm168_vm0 = vcmask 1040384   ;;  %vm170_vm1 = vcmask 1041408   ;;  %vm172_vm2 = vcmask 1042432   ;;  %vm174_vm3 = vcmask 1043456   ;;  %s734_s0 = inlined_call_operand.vmem [shape: f32[1,32,128], index: 0, kind: input, shape index: {}]   ;;  %s735_s1 = inlined_call_operand.vmem [shape: f32[8,32,128], index: 1, kind: input, shape index: {}]   ;;  %s736_s3 = inlined_call_operand.vmem [shape: s8[8,128], index: 3, kind: input, shape index: {}]   ;;  %s737_s2 = inlined_call_operand.vmem [shape: f32[8,32,128], index: 2, kind: input, shape index: {}]   ;;  %s738_s5 = inlined_call_operand.vmem [shape: f32[1,8,128], index: 5, kind: output, shape index: {1}]   ;;  %s739_s4 = inlined_call_operand.vmem [shape: f32[1,32,128], index: 4, kind: output, shape index: {0}]  }
   0x1   :  { %v456_v0 = vld [vmem:[%s734_s0] sm:$0xff]  ;;  %v461_v1 = vld [vmem:[%s734_s0 + $0x8] sm:$0xff]  ;;  %v466_v2 = vld [vmem:[%s734_s0 + $0x10] sm:$0xff]  ;;  %vm176_vm5 = vcmask 1044480   ;;  %vm178_vm6 = vcmask 1045504   ;;  %vm180_vm7 = vcmask 1046528  }
   0x2   :  { %v471_v3 = vld [vmem:[%s734_s0 + $0x18] sm:$0xff]  ;;  %v25_v4 = vld [vmem:[%s735_s1] sm:$0xff]  ;;  %v26_v5 = vld [vmem:[%s735_s1 + $0x8] sm:$0xff] }
   0x3   :  { %v27_v6 = vld [vmem:[%s735_s1 + $0x10] sm:$0xff]  ;;  %v28_v7 = vld [vmem:[%s735_s1 + $0x18] sm:$0xff]  ;;  %v29_v8 = vmul.f32 %v25_v4, %v456_v0  ;;  %v30_v9 = vmul.f32 %v26_v5, %v461_v1  ;;  %v353_v10 = vld [vmem:[%s735_s1 + $0x20] sm:$0xff] }
   0x4   :  { %v31_v11 = vmul.f32 %v27_v6, %v466_v2  ;;  %v354_v12 = vld [vmem:[%s735_s1 + $0x28] sm:$0xff]  ;;  %v355_v13 = vld [vmem:[%s735_s1 + $0x30] sm:$0xff]  ;;  %v356_v14 = vld [vmem:[%s735_s1 + $0x38] sm:$0xff]  ;;  %v47_v15 = vmul.f32 %v353_v10, %v456_v0  ;;  %v32_v16 = vmul.f32 %v28_v7, %v471_v3 }
   0x5   :  { %v33_v17 = vadd.f32 %v30_v9, %v29_v8  ;;  %v48_v18 = vmul.f32 %v354_v12, %v461_v1  ;;  %v49_v19 = vmul.f32 %v355_v13, %v466_v2  ;;  %v357_v20 = vld [vmem:[%s735_s1 + $0x40] sm:$0xff]  ;;  %v358_v21 = vld [vmem:[%s735_s1 + $0x48] sm:$0xff]  ;;  %v359_v22 = vld [vmem:[%s735_s1 + $0x50] sm:$0xff]  ;;  %v50_v23 = vmul.f32 %v356_v14, %v471_v3 }
   0x6   :  { %v360_v24 = vld [vmem:[%s735_s1 + $0x58] sm:$0xff]  ;;  %v65_v25 = vmul.f32 %v357_v20, %v456_v0  ;;  %v66_v26 = vmul.f32 %v358_v21, %v461_v1  ;;  %v67_v27 = vmul.f32 %v359_v22, %v466_v2  ;;  %v361_v28 = vld [vmem:[%s735_s1 + $0x60] sm:$0xff]  ;;  %v362_v29 = vld [vmem:[%s735_s1 + $0x68] sm:$0xff] }
   0x7   :  { %v34_v30 = vadd.f32 %v33_v17, %v31_v11  ;;  %v51_v31 = vadd.f32 %v48_v18, %v47_v15  ;;  %v68_v32 = vmul.f32 %v360_v24, %v471_v3  ;;  %v363_v33 = vld [vmem:[%s735_s1 + $0x70] sm:$0xff]  ;;  %v364_v34 = vld [vmem:[%s735_s1 + $0x78] sm:$0xff]  ;;  %v83_v35 = vmul.f32 %v361_v28, %v456_v0  ;;  %v365_v36 = vld [vmem:[%s735_s1 + $0x80] sm:$0xff] }
   0x8   :  { %v69_v37 = vadd.f32 %v66_v26, %v65_v25  ;;  %v84_v38 = vmul.f32 %v362_v29, %v461_v1  ;;  %v85_v39 = vmul.f32 %v363_v33, %v466_v2  ;;  %v86_v40 = vmul.f32 %v364_v34, %v471_v3  ;;  %v366_v41 = vld [vmem:[%s735_s1 + $0x88] sm:$0xff]  ;;  %v367_v42 = vld [vmem:[%s735_s1 + $0x90] sm:$0xff]  ;;  %v368_v43 = vld [vmem:[%s735_s1 + $0x98] sm:$0xff] }
   0x9   :  { %v35_v44 = vadd.f32 %v34_v30, %v32_v16  ;;  %v52_v45 = vadd.f32 %v51_v31, %v49_v19  ;;  %v101_v46 = vmul.f32 %v365_v36, %v456_v0  ;;  %v102_v47 = vmul.f32 %v366_v41, %v461_v1  ;;  %v369_v48 = vld [vmem:[%s735_s1 + $0xa0] sm:$0xff]  ;;  %v370_v49 = vld [vmem:[%s735_s1 + $0xa8] sm:$0xff]  ;;  %v371_v50 = vld [vmem:[%s735_s1 + $0xb0] sm:$0xff] }
   0xa   :  { %v70_v51 = vadd.f32 %v69_v37, %v67_v27  ;;  %v87_v52 = vadd.f32 %v84_v38, %v83_v35  ;;  %v103_v53 = vmul.f32 %v367_v42, %v466_v2  ;;  %v104_v54 = vmul.f32 %v368_v43, %v471_v3  ;;  %v372_v55 = vld [vmem:[%s735_s1 + $0xb8] sm:$0xff]  ;;  %v373_v60 = vld [vmem:[%s735_s1 + $0xc0] sm:$0xff]  ;;  %v374_v5 = vld [vmem:[%s735_s1 + $0xc8] sm:$0xff] }
   0xb   :  { %v36_v56 = vrot.slane %v35_v44, 4  ;;  %v53_v57 = vadd.f32 %v52_v45, %v50_v23  ;;  %v105_v58 = vadd.f32 %v102_v47, %v101_v46  ;;  %v119_v59 = vmul.f32 %v369_v48, %v456_v0  ;;  %v375_v10 = vld [vmem:[%s735_s1 + $0xd0] sm:$0xff]  ;;  %v376_v14 = vld [vmem:[%s735_s1 + $0xd8] sm:$0xff]  ;;  %v377_v24 = vld [vmem:[%s735_s1 + $0xe0] sm:$0xff] }
   0xc   :  { %v71_v61 = vadd.f32 %v70_v51, %v68_v32  ;;  %v88_v62 = vadd.f32 %v87_v52, %v85_v39  ;;  %v120_v63 = vmul.f32 %v370_v49, %v461_v1  ;;  %v121_v4 = vmul.f32 %v371_v50, %v466_v2  ;;  %v378_v33 = vld [vmem:[%s735_s1 + $0xe8] sm:$0xff]  ;;  %v379_v42 = vld [vmem:[%s735_s1 + $0xf0] sm:$0xff] }
   0xd   :  { %v37_v6 = vadd.f32 %v36_v56, %v35_v44  ;;  %v54_v7 = vrot.slane %v53_v57, 4  ;;  %v106_v8 = vadd.f32 %v105_v58, %v103_v53  ;;  %v122_v9 = vmul.f32 %v372_v55, %v471_v3 }
   0xe   :  { %v72_v11 = vrot.slane %v71_v61, 4  ;;  %v89_v12 = vadd.f32 %v88_v62, %v86_v40  ;;  %v123_v13 = vadd.f32 %v120_v63, %v119_v59  ;;  %v137_v15 = vmul.f32 %v373_v60, %v456_v0 }
   0xf   :  { %v38_v16 = vrot.slane %v37_v6, 2  ;;  %v55_v17 = vadd.f32 %v54_v7, %v53_v57  ;;  %v107_v18 = vadd.f32 %v106_v8, %v104_v54  ;;  %v138_v19 = vmul.f32 %v374_v5, %v461_v1 }
  0x10   :  { %v73_v20 = vadd.f32 %v72_v11, %v71_v61  ;;  %v90_v21 = vrot.slane %v89_v12, 4  ;;  %v124_v22 = vadd.f32 %v123_v13, %v121_v4  ;;  %v139_v23 = vmul.f32 %v375_v10, %v466_v2 }
  0x11   :  { %v39_v25 = vadd.f32 %v38_v16, %v37_v6  ;;  %v56_v26 = vrot.slane %v55_v17, 2  ;;  %v108_v27 = vrot.slane %v107_v18, 4  ;;  %v140_v28 = vmul.f32 %v376_v14, %v471_v3 }
  0x12   :  { %v74_v29 = vrot.slane %v73_v20, 2  ;;  %v91_v30 = vadd.f32 %v90_v21, %v89_v12  ;;  %v125_v31 = vadd.f32 %v124_v22, %v122_v9  ;;  %v141_v32 = vadd.f32 %v138_v19, %v137_v15 }
  0x13   :  { %v40_v34 = vrot.slane %v39_v25, 1  ;;  %v57_v35 = vadd.f32 %v56_v26, %v55_v17  ;;  %v109_v36 = vadd.f32 %v108_v27, %v107_v18  ;;  %v155_v37 = vmul.f32 %v377_v24, %v456_v0  ;;  %v380_v0 = vld [vmem:[%s735_s1 + $0xf8] sm:$0xff] }
  0x14   :  { %v75_v38 = vadd.f32 %v74_v29, %v73_v20  ;;  %v92_v39 = vrot.slane %v91_v30, 2  ;;  %v126_v40 = vrot.slane %v125_v31, 4  ;;  %v142_v41 = vadd.f32 %v141_v32, %v139_v23 }
  0x15   :  { %v41_v43 = vadd.f32 %v40_v34, %v39_v25  ;;  %v58_v44 = vrot.slane %v57_v35, 1  ;;  %v110_v45 = vrot.slane %v109_v36, 2  ;;  %v156_v46 = vmul.f32 %v378_v33, %v461_v1 }
  0x16   :  { %v76_v47 = vrot.slane %v75_v38, 1  ;;  %v93_v48 = vadd.f32 %v92_v39, %v91_v30  ;;  %v127_v49 = vadd.f32 %v126_v40, %v125_v31  ;;  %v143_v50 = vadd.f32 %v142_v41, %v140_v28 }
  0x17   :  { %v59_v51 = vadd.f32 %v58_v44, %v57_v35  ;;  %v111_v52 = vadd.f32 %v110_v45, %v109_v36  ;;  %v157_v53 = vmul.f32 %v379_v42, %v466_v2  ;;  %v158_v58 = vmul.f32 %v380_v0, %v471_v3  ;;  %v182_v2 = vld [vmem:[%s736_s3] sm:$0x3] }
  0x18   :  { %v77_v54 = vadd.f32 %v76_v47, %v75_v38  ;;  %v94_v55 = vrot.slane %v93_v48, 1  ;;  %v128_v56 = vrot.slane %v127_v49, 2  ;;  %v144_v57 = vrot.slane %v143_v50, 4 }
  0x19   :  { %v159_v59 = vadd.f32 %v156_v46, %v155_v37  ;;  %v169_v1 = vsel %vm168_vm0, %v41_v43, %v59_v51  ;;  %v112_v60 = vrot.slane %v111_v52, 1  ;;  %vm183_vm4 = vnez %v182_v2  ;;  %v205_v51 = vld [vmem:[%s737_s2] sm:$0xff] }
  0x1a   :  { %v129_v61 = vadd.f32 %v128_v56, %v127_v49  ;;  %v145_v62 = vadd.f32 %v144_v57, %v143_v50  ;;  %v95_v63 = vadd.f32 %v94_v55, %v93_v48  ;;  %v171_v6 = vsel %vm170_vm1, %v169_v1, %v77_v54  ;;  %v393_v2 = vld [vmem:[%s737_s2 + $0x80] sm:$0xff] }
  0x1b   :  { %v160_v4 = vadd.f32 %v159_v59, %v157_v53  ;;  %v113_v9 = vadd.f32 %v112_v60, %v111_v52  ;;  %v422_v16 = vmov 0   ;;  %v209_v43 = vlaneseq  ;;  %v381_v52 = vld [vmem:[%s737_s2 + $0x20] sm:$0xff] }
  0x1c   :  { %v146_v5 = vrot.slane %v145_v62, 2  ;;  %v130_v7 = vrot.slane %v129_v61, 1  ;;  %v173_v11 = vsel %vm172_vm2, %v171_v6, %v95_v63  ;;  %v184_v17 = vsel %vm183_vm4, 16843009, %v422_v16  ;;  %v385_v53 = vld [vmem:[%s737_s2 + $0x40] sm:$0xff]  ;;  %v386_v63 = vld [vmem:[%s737_s2 + $0x48] sm:$0xff] }
  0x1d   :  { %v161_v8 = vadd.f32 %v160_v4, %v158_v58  ;;  %v175_v15 = vsel %vm174_vm3, %v173_v11, %v113_v9  ;;  %v185_v22 = vunpack.c.0.s8 %v184_v17  ;;  %v210_v44 = vshrl.u32 %v209_v43, 7  ;;  %v389_v59 = vld [vmem:[%s737_s2 + $0x60] sm:$0xff]  ;;  %v207_v11 = vld [vmem:[%s737_s2 + $0x10] sm:$0xff] }
  0x1e   :  { %v147_v3 = vadd.f32 %v146_v5, %v145_v62  ;;  %v131_v13 = vadd.f32 %v130_v7, %v129_v61  ;;  %v206_v61 = vld [vmem:[%s737_s2 + $0x8] sm:$0xff]  ;;  %v383_v17 = vld [vmem:[%s737_s2 + $0x30] sm:$0xff] }
  0x1f   :  { %v162_v10 = vrot.slane %v161_v8, 4  ;;  %vm186_vm8 = vcmp.ne.s32.totalorder %v185_v22, 0  ;;  %v211_v45 = vsub.s32 0, %v210_v44  ;;  %v224_v46 = vsub.s32 1, %v210_v44  ;;  %v382_v62 = vld [vmem:[%s737_s2 + $0x28] sm:$0xff] }
  0x20   :  { %v148_v12 = vrot.slane %v147_v3, 1  ;;  %v177_v21 = vsel %vm176_vm5, %v175_v15, %v131_v13  ;;  %v241_v47 = vsub.s32 2, %v210_v44  ;;  %v258_v48 = vsub.s32 3, %v210_v44  ;;  %v397_v13 = vld [vmem:[%s737_s2 + $0xa0] sm:$0xff] }
  0x21   :  { %v163_v14 = vadd.f32 %v162_v10, %v161_v8  ;;  %v275_v50 = vsub.s32 4, %v210_v44  ;;  %v292_v54 = vsub.s32 5, %v210_v44  ;;  %v309_v55 = vsub.s32 6, %v210_v44  ;;  %v390_v10 = vld [vmem:[%s737_s2 + $0x68] sm:$0xff] }
  0x22   :  { %v149_v19 = vadd.f32 %v148_v12, %v147_v3  ;;  %v326_v3 = vsub.s32 7, %v210_v44 }
  0x23   :  { %v164_v18 = vrot.slane %v163_v14, 2 }
  0x24   :  { %v179_v24 = vsel %vm178_vm6, %v177_v21, %v149_v19  ;;  %v394_v21 = vld [vmem:[%s737_s2 + $0x88] sm:$0xff] }
  0x25   :  { %v165_v20 = vadd.f32 %v164_v18, %v163_v14  ;;  %v387_v18 = vld [vmem:[%s737_s2 + $0x50] sm:$0xff] }
  0x27   :  { %v166_v23 = vrot.slane %v165_v20, 1 }
  0x29   :  { %v167_v25 = vadd.f32 %v166_v23, %v165_v20  ;;  %v401_v20 = vld [vmem:[%s737_s2 + $0xc0] sm:$0xff] }
  0x2b   :  { %v181_v26 = vsel %vm180_vm7, %v179_v24, %v167_v25 }
  0x2c   :  { %v187_v27 = vsel %vm186_vm8, -1e+20, %v181_v26  ;;  %v391_v26 = vld [vmem:[%s737_s2 + $0x70] sm:$0xff] }
  0x2d   :  { %v188_v28 = vrot.slane %v187_v27, 4 }
  0x2f   :  { %v189_v29 = vmax.f32 %v187_v27, %v188_v28  ;;  %v384_v28 = vld [vmem:[%s737_s2 + $0x38] sm:$0xff] }
  0x31   :  { %v190_v30 = vrot.slane %v189_v29, 2 }
  0x33   :  { %v191_v31 = vmax.f32 %v189_v29, %v190_v30 }
  0x35   :  { %v192_v32 = vrot.slane %v191_v31, 1 }
  0x37   :  { %v193_v33 = vmax.f32 %v191_v31, %v192_v32  ;;  %v398_v31 = vld [vmem:[%s737_s2 + $0xa8] sm:$0xff] }
  0x39   :  { %v194_v34 = vsub.f32 %v187_v27, %v193_v33  ;;  %v208_v27 = vld [vmem:[%s737_s2 + $0x18] sm:$0xff] }
  0x3b   :  { %v195_v35 = vmul.f32 1.442695, %v194_v34  ;;  %v388_v34 = vld [vmem:[%s737_s2 + $0x58] sm:$0xff] }
  0x3d   :  { %410 = vpow2.f32 %v195_v35 }
  0x47   :  { %v411_v36 = vpop.eup %410 }
  0x48   :  { %v197_v37 = vrot.slane %v411_v36, 4 }
  0x4a   :  { %v198_v38 = vadd.f32 %v411_v36, %v197_v37 }
  0x4c   :  { %v199_v39 = vrot.slane %v198_v38, 2 }
  0x4e   :  { %v200_v40 = vadd.f32 %v199_v39, %v198_v38  ;;  %v395_v39 = vld [vmem:[%s737_s2 + $0x90] sm:$0xff] }
  0x50   :  { %v201_v41 = vrot.slane %v200_v40, 1 }
  0x52   :  { %v202_v42 = vadd.f32 %v201_v41, %v200_v40  ;;  %v392_v40 = vld [vmem:[%s737_s2 + $0x78] sm:$0xff]  ;;  %v405_v41 = vld [vmem:[%s737_s2 + $0xe0] sm:$0xff] }
  0x54   :  { %412 = vrcp.f32 %v202_v42  ;;  %v402_v42 = vld [vmem:[%s737_s2 + $0xc8] sm:$0xff] }
  0x5e   :  { %v413_v49 = vpop.eup %412 }
  0x5f   :  { %v204_v0 = vmul.f32 %v413_v49, %v411_v36 }
  0x61   :  { %v212_v56 = vrot.slane %v204_v0, %v211_v45  ;;  %v225_v57 = vrot.slane %v204_v0, %v224_v46  ;;  %v242_v58 = vrot.slane %v204_v0, %v241_v47  ;;  %v259_v1 = vrot.slane %v204_v0, %v258_v48  ;;  %344 = vst [vmem:[%s738_s5] sm:$0xff] %v204_v0 }
  0x62   :  { %v620_v60 = vrot.slane %v204_v0, %v275_v50  ;;  %v634_v8 = vrot.slane %v204_v0, %v292_v54  ;;  %v636_v9 = vrot.slane %v204_v0, %v309_v55  ;;  %v327_v30 = vrot.slane %v204_v0, %v326_v3  ;;  %v399_v50 = vld [vmem:[%s737_s2 + $0xb0] sm:$0xff] }
  0x63   :  { %v213_v4 = vmul.f32 %v212_v56, %v205_v51  ;;  %v226_v5 = vmul.f32 %v381_v52, %v225_v57  ;;  %v243_v6 = vmul.f32 %v385_v53, %v242_v58  ;;  %v260_v7 = vmul.f32 %v389_v59, %v259_v1  ;;  %v396_v51 = vld [vmem:[%s737_s2 + $0x98] sm:$0xff]  ;;  %v406_v52 = vld [vmem:[%s737_s2 + $0xe8] sm:$0xff] }
  0x64   :  { %v214_v14 = vmul.f32 %v212_v56, %v206_v61  ;;  %v227_v15 = vmul.f32 %v382_v62, %v225_v57  ;;  %v244_v16 = vmul.f32 %v386_v63, %v242_v58  ;;  %v277_v19 = vmul.f32 %v393_v2, %v620_v60  ;;  %v400_v63 = vld [vmem:[%s737_s2 + $0xb8] sm:$0xff] }
  0x65   :  { %v230_v12 = vadd.f32 %v226_v5, %v213_v4  ;;  %v261_v24 = vmul.f32 %v390_v10, %v259_v1  ;;  %v215_v25 = vmul.f32 %v212_v56, %v207_v11  ;;  %v294_v29 = vmul.f32 %v397_v13, %v634_v8  ;;  %v407_v10 = vld [vmem:[%s737_s2 + $0xf0] sm:$0xff]  ;;  %v404_v11 = vld [vmem:[%s737_s2 + $0xd8] sm:$0xff] }
  0x66   :  { %v231_v23 = vadd.f32 %v227_v15, %v214_v14  ;;  %v228_v32 = vmul.f32 %v383_v17, %v225_v57  ;;  %v245_v33 = vmul.f32 %v387_v18, %v242_v58  ;;  %v311_v36 = vmul.f32 %v401_v20, %v636_v9 }
  0x67   :  { %v247_v22 = vadd.f32 %v243_v6, %v230_v12  ;;  %v278_v38 = vmul.f32 %v394_v21, %v620_v60  ;;  %v262_v44 = vmul.f32 %v391_v26, %v259_v1  ;;  %v216_v45 = vmul.f32 %v212_v56, %v208_v27 }
  0x68   :  { %v248_v37 = vadd.f32 %v244_v16, %v231_v23  ;;  %v232_v43 = vadd.f32 %v228_v32, %v215_v25  ;;  %v229_v46 = vmul.f32 %v384_v28, %v225_v57  ;;  %v295_v49 = vmul.f32 %v398_v31, %v634_v8 }
  0x69   :  { %v264_v35 = vadd.f32 %v260_v7, %v247_v22  ;;  %v246_v0 = vmul.f32 %v388_v34, %v242_v58  ;;  %v279_v54 = vmul.f32 %v395_v39, %v620_v60  ;;  %v263_v56 = vmul.f32 %v392_v40, %v259_v1  ;;  %v403_v58 = vld [vmem:[%s737_s2 + $0xd0] sm:$0xff] }
  0x6a   :  { %v265_v48 = vadd.f32 %v261_v24, %v248_v37  ;;  %v249_v53 = vadd.f32 %v245_v33, %v232_v43  ;;  %v233_v55 = vadd.f32 %v229_v46, %v216_v45  ;;  %v328_v59 = vmul.f32 %v405_v41, %v327_v30 }
  0x6b   :  { %v281_v47 = vadd.f32 %v277_v19, %v264_v35  ;;  %v312_v62 = vmul.f32 %v402_v42, %v636_v9  ;;  %v296_v5 = vmul.f32 %v399_v50, %v634_v8  ;;  %v280_v2 = vmul.f32 %v396_v51, %v620_v60  ;;  %v408_v60 = vld [vmem:[%s737_s2 + $0xf8] sm:$0xff] }
  0x6c   :  { %v282_v61 = vadd.f32 %v278_v38, %v265_v48  ;;  %v266_v4 = vadd.f32 %v262_v44, %v249_v53  ;;  %v250_v6 = vadd.f32 %v246_v0, %v233_v55  ;;  %v329_v3 = vmul.f32 %v406_v52, %v327_v30 }
  0x6d   :  { %v298_v57 = vadd.f32 %v294_v29, %v281_v47  ;;  %v313_v13 = vmul.f32 %v403_v58, %v636_v9  ;;  %v297_v15 = vmul.f32 %v400_v63, %v634_v8  ;;  %v330_v19 = vmul.f32 %v407_v10, %v327_v30 }
  0x6e   :  { %v299_v7 = vadd.f32 %v295_v49, %v282_v61  ;;  %v283_v12 = vadd.f32 %v279_v54, %v266_v4  ;;  %v267_v14 = vadd.f32 %v263_v56, %v250_v6  ;;  %v314_v21 = vmul.f32 %v404_v11, %v636_v9 }
  0x6f   :  { %v315_v1 = vadd.f32 %v311_v36, %v298_v57  ;;  %v331_v25 = vmul.f32 %v408_v60, %v327_v30 }
  0x70   :  { %v316_v17 = vadd.f32 %v312_v62, %v299_v7  ;;  %v300_v18 = vadd.f32 %v296_v5, %v283_v12  ;;  %v284_v20 = vadd.f32 %v280_v2, %v267_v14 }
  0x71   :  { %v332_v16 = vadd.f32 %v328_v59, %v315_v1 }
  0x72   :  { %v333_v22 = vadd.f32 %v329_v3, %v316_v17  ;;  %v317_v23 = vadd.f32 %v313_v13, %v300_v18  ;;  %v301_v24 = vadd.f32 %v297_v15, %v284_v20 }
  0x73   :  { %414 = vtanh.f32 %v332_v16 }
  0x74   :  { %416 = vtanh.f32 %v333_v22  ;;  %v334_v26 = vadd.f32 %v330_v19, %v317_v23  ;;  %v318_v27 = vadd.f32 %v314_v21, %v301_v24 }
  0x76   :  { %418 = vtanh.f32 %v334_v26  ;;  %v335_v8 = vadd.f32 %v331_v25, %v318_v27 }
  0x78   :  { %420 = vtanh.f32 %v335_v8 }
  0x7d   :  { %v415_v28 = vpop.eup %414 }
  0x7e   :  { %340 = vst [vmem:[%s739_s4] sm:$0xff] %v415_v28  ;;  %v417_v29 = vpop.eup %416 }
  0x7f   :  { %341 = vst [vmem:[%s739_s4 + $0x8] sm:$0xff] %v417_v29 }
  0x80   :  { %v419_v9 = vpop.eup %418 }
  0x81   :  { %342 = vst [vmem:[%s739_s4 + $0x10] sm:$0xff] %v419_v9 }
  0x82   :  { %v421_v30 = vpop.eup %420 }
  0x83   :  { %343 = vst [vmem:[%s739_s4 + $0x18] sm:$0xff] %v421_v30 }

</bundles_post_ra>
